<compile_context>
chip_gen: v7x
topology: tpu7x:2x2x1
jax: 0.10.0
libtpu: 0.0.40
codegen_flags: <defaults>
</compile_context>

<pallas_src>
import functools

import jax
import jax.numpy as jnp
import numpy as np
from jax.experimental import pallas as pl
from jax.experimental.pallas import tpu as pltpu

_VMEM_STEP_BUDGET = 24 * 1024 * 1024   # target footprint of all live blocks per grid step
_VMEM_LIMIT = 32 * 1024 * 1024         # scoped VMEM limit (ok on v5e / v6e / v7x)


def _round_up(x, m):
    return -(-x // m) * m


def _min_value(dtype):
    dtype = jnp.dtype(dtype)
    if jnp.issubdtype(dtype, jnp.floating):
        return float("-inf")
    if jnp.issubdtype(dtype, jnp.integer):
        return int(jnp.iinfo(dtype).min)
    if dtype == jnp.bool_:
        return False
    raise NotImplementedError(f"max_layer: unsupported dtype {dtype}")


def _acc_dtype(dtype):
    # Accumulate narrow floats in f32, cast once at the end.
    if jnp.issubdtype(jnp.dtype(dtype), jnp.floating):
        return jnp.dtype(jnp.float32)
    return jnp.dtype(dtype)


# --------------------------------------------------------------------------
# Kernels
# --------------------------------------------------------------------------
def _max_sublane_kernel(x_ref, o_ref, acc_ref, *, r_total, tr, minval):
    """Max over the sublane (middle) axis of a (PB, TR, TN) block."""
    k = pl.program_id(2)

    @pl.when(k == 0)
    def _init():
        acc_ref[...] = jnp.full(acc_ref.shape, minval, acc_ref.dtype)

    x = x_ref[...].astype(acc_ref.dtype)                    # (PB, TR, TN)
    if r_total % tr != 0:                                   # static: ragged last R block
        rows = jax.lax.broadcasted_iota(jnp.int32, x.shape, 1) + k * tr
        x = jnp.where(rows < r_total, x, minval)
    acc_ref[...] = jnp.maximum(acc_ref[...], jnp.max(x, axis=1, keepdims=True))

    @pl.when(k == pl.num_programs(2) - 1)
    def _finalize():
        o_ref[...] = acc_ref[...].astype(o_ref.dtype)


def _max_lane_kernel(x_ref, o_ref, acc_ref, *, r_total, trl, minval):
    """Max over the lane (last) axis of a (TB, TRL) block."""
    k = pl.program_id(1)

    @pl.when(k == 0)
    def _init():
        acc_ref[...] = jnp.full(acc_ref.shape, minval, acc_ref.dtype)

    x = x_ref[...].astype(acc_ref.dtype)                    # (TB, TRL)
    if r_total % trl != 0:                                  # static: ragged last block
        cols = jax.lax.broadcasted_iota(jnp.int32, x.shape, 1) + k * trl
        x = jnp.where(cols < r_total, x, minval)
    acc_ref[...] = jnp.maximum(acc_ref[...], jnp.max(x, axis=1, keepdims=True))

    @pl.when(k == pl.num_programs(1) - 1)
    def _finalize():
        o_ref[...] = acc_ref[...].astype(o_ref.dtype)


# --------------------------------------------------------------------------
# Tile selection (VMEM-budget aware; accounts for (8,128) padding)
# --------------------------------------------------------------------------
def _choose_lane_tile(mp, tr, itemsize):
    """Largest multiple of 128 dividing mp that fits the per-step budget."""
    n128 = mp // 128
    tr_pad = _round_up(tr, 8)
    per_unit = 128 * (2 * tr_pad * itemsize + 2 * 8 * itemsize + 8 * 4)
    max_units = max(1, _VMEM_STEP_BUDGET // per_unit)
    for d in range(min(n128, max_units), 0, -1):
        if n128 % d == 0:
            return d * 128
    return 128


def _choose_pre_tile(pre, tr, tn, itemsize):
    """Batch several `pre` slices per block when lane/reduction tiles are small."""
    tr_pad = _round_up(tr, 8)
    per_pb = 2 * tr_pad * tn * itemsize + 2 * 8 * tn * itemsize + 8 * tn * 4
    pb = max(1, _VMEM_STEP_BUDGET // per_pb)
    return int(min(pb, pre, 256))


def _choose_row_tile(pre, trl, itemsize):
    lane_pad = _round_up(trl, 128)
    per_row = 2 * lane_pad * itemsize + 2 * 128 * itemsize + 128 * 4
    rows = max(8, _VMEM_STEP_BUDGET // per_row)
    rows = min(rows, 4096)
    if rows >= pre:
        return pre
    return max(8, (rows // 8) * 8)


# --------------------------------------------------------------------------
# Wrapper
# --------------------------------------------------------------------------
@functools.partial(jax.jit, static_argnames=("dim",))
def max_layer(x, dim):
    """Pallas equivalent of MaxLayer.forward: torch.max(x, dim=dim).values."""
    ndim = x.ndim
    dim = dim % ndim
    shape = x.shape
    r = shape[dim]
    if r == 0:
        raise ValueError("max_layer: cannot reduce over an empty axis")

    itemsize = jnp.dtype(x.dtype).itemsize
    acc_dt = _acc_dtype(x.dtype)
    minval = _min_value(acc_dt)
    out_shape = shape[:dim] + shape[dim + 1:]

    if dim == ndim - 1:
        # ---- Reduce over the last (lane) axis: natural layout, no transpose.
        pre = int(np.prod(shape[:-1], dtype=np.int64))
        x2 = x.reshape(pre, r)                         # zero-copy reshape
        trl = r if r <= 4096 else 4096                 # full R or 128-multiple blocks
        tb = _choose_row_tile(pre, trl, itemsize)
        grid = (pl.cdiv(pre, tb), pl.cdiv(r, trl))

        out2 = pl.pallas_call(
            functools.partial(_max_lane_kernel, r_total=r, trl=trl, minval=minval),
            out_shape=jax.ShapeDtypeStruct((pre, 1), x.dtype),
            grid_spec=pltpu.PrefetchScalarGridSpec(
                num_scalar_prefetch=0,
                grid=grid,
                in_specs=[pl.BlockSpec((tb, trl), lambda i, k: (i, k))],
                out_specs=pl.BlockSpec((tb, 1), lambda i, k: (i, 0)),
                scratch_shapes=[pltpu.VMEM((tb, 1), acc_dt)],
            ),
            compiler_params=pltpu.CompilerParams(
                dimension_semantics=("parallel", "arbitrary"),
                vmem_limit_bytes=_VMEM_LIMIT,
            ),
        )(x2)
        return out2.reshape(out_shape)

    # ---- Reduce over a non-last axis: (pre, R, post); R on sublanes, no transpose.
    pre = int(np.prod(shape[:dim], dtype=np.int64))
    post = int(np.prod(shape[dim + 1:], dtype=np.int64))
    x3 = x.reshape(pre, r, post)                       # zero-copy reshape

    mp = _round_up(post, 128)
    if mp != post:
        # Padded lanes never mix into real outputs (max is lane-wise); they
        # are sliced away after the kernel, so padding with 0 is fine.
        x3 = jnp.pad(x3, ((0, 0), (0, 0), (0, mp - post)))

    tr = r if r <= 1024 else 1024                      # blocked reduction axis
    tn = _choose_lane_tile(mp, tr, itemsize)
    pb = _choose_pre_tile(pre, tr, tn, itemsize)
    grid = (pl.cdiv(pre, pb), mp // tn, pl.cdiv(r, tr))

    out3 = pl.pallas_call(
        functools.partial(_max_sublane_kernel, r_total=r, tr=tr, minval=minval),
        out_shape=jax.ShapeDtypeStruct((pre, 1, mp), x.dtype),
        grid_spec=pltpu.PrefetchScalarGridSpec(
            num_scalar_prefetch=0,
            grid=grid,
            in_specs=[pl.BlockSpec((pb, tr, tn), lambda b, j, k: (b, k, j))],
            out_specs=pl.BlockSpec((pb, 1, tn), lambda b, j, k: (b, 0, j)),
            scratch_shapes=[pltpu.VMEM((pb, 1, tn), acc_dt)],
        ),
        compiler_params=pltpu.CompilerParams(
            dimension_semantics=("parallel", "parallel", "arbitrary"),
            vmem_limit_bytes=_VMEM_LIMIT,
        ),
    )(x3)

    return out3[:, 0, :post].reshape(out_shape)


if __name__ == "__main__":
    key = jax.random.PRNGKey(0)
    # Small NCHW feature map consistent with what MaxLayer would see.
    x = jax.random.normal(key, (2, 4, 16, 16), dtype=jnp.float32)

    # Channel-wise max, like MaxLayer(dim=1).
    out = jax.block_until_ready(max_layer(x, 1))
    ref = jnp.max(x, axis=1)
    assert out.shape == ref.shape, (out.shape, ref.shape)
    np.testing.assert_allclose(np.asarray(out), np.asarray(ref), rtol=0, atol=0)

    # Other axes: leading axis, non-last axis needing lane padding, and the
    # lane-reduction (last-axis) path.
    for d in (0, 2, 3):
        got = jax.block_until_ready(max_layer(x, d))
        np.testing.assert_allclose(np.asarray(got), np.asarray(jnp.max(x, axis=d)),
                                   rtol=0, atol=0)

    # Larger reduction axis exercises the blocked-R accumulator + ragged mask.
    x_big = jax.random.normal(jax.random.PRNGKey(1), (1, 1030, 256), dtype=jnp.float32)
    got_big = jax.block_until_ready(max_layer(x_big, 1))
    np.testing.assert_allclose(np.asarray(got_big), np.asarray(jnp.max(x_big, axis=1)),
                               rtol=0, atol=0)

    # bf16 exercises the f32-accumulation path (exact for max).
    xb = x.astype(jnp.bfloat16)
    got_b = jax.block_until_ready(max_layer(xb, 1))
    np.testing.assert_array_equal(np.asarray(got_b.astype(jnp.float32)),
                                  np.asarray(jnp.max(xb, axis=1).astype(jnp.float32)))

    print("KERNEL_OK")
</pallas_src>

<mosaic_0001>
module attributes {stable_mosaic.version = 11 : i64} {
  func.func @_max_sublane_kernel(%arg0: i32, %arg1: i32, %arg2: i32, %arg3: memref<2x4x256xf32, #tpu.memory_space<vmem>>, %arg4: memref<2x1x256xf32, #tpu.memory_space<vmem>>, %arg5: memref<2x1x256xf32, #tpu.memory_space<vmem>>) attributes {dimension_semantics = [#tpu.dimension_semantics<parallel>, #tpu.dimension_semantics<parallel>, #tpu.dimension_semantics<arbitrary>], iteration_bounds = array<i64: 1, 1, 1>, scalar_prefetch = 0 : i64, scratch_operands = 1 : i64, tpu.core_type = #tpu.core_type<tc>, window_params = [{transform_indices = @transform_0, window_bounds = array<i64: 2, 4, 256>}, {transform_indices = @transform_1, window_bounds = array<i64: 2, 1, 256>}]} {
    %c0_i32 = arith.constant 0 : i32
    %0 = arith.cmpi eq, %arg2, %c0_i32 : i32
    %1 = arith.extui %0 : i1 to i32
    %c0_i32_0 = arith.constant 0 : i32
    %2 = arith.cmpi ne, %1, %c0_i32_0 : i32
    scf.if %2 {
      %cst_11 = arith.constant 0xFF800000 : f32
      %12 = vector.broadcast %cst_11 : f32 to vector<2x1x256xf32>
      %c0_12 = arith.constant 0 : index
      %c0_13 = arith.constant 0 : index
      %c0_14 = arith.constant 0 : index
      %13 = vector.load %arg5[%c0_12, %c0_13, %c0_14] : memref<2x1x256xf32, #tpu.memory_space<vmem>>, vector<2x1x256xf32>
      tpu.vector_store %arg5[%c0_12, %c0_13, %c0_14], %12 {strides = array<i32>} : memref<2x1x256xf32, #tpu.memory_space<vmem>>, vector<2x1x256xf32>,
    } else {
    }
    %c0 = arith.constant 0 : index
    %c0_1 = arith.constant 0 : index
    %c0_2 = arith.constant 0 : index
    %3 = vector.load %arg3[%c0, %c0_1, %c0_2] : memref<2x4x256xf32, #tpu.memory_space<vmem>>, vector<2x4x256xf32>
    %c0_3 = arith.constant 0 : index
    %c0_4 = arith.constant 0 : index
    %c0_5 = arith.constant 0 : index
    %4 = vector.load %arg5[%c0_3, %c0_4, %c0_5] : memref<2x1x256xf32, #tpu.memory_space<vmem>>, vector<2x1x256xf32>
    %cst = arith.constant dense<0xFF800000> : vector<2x256xf32>
    %5 = vector.multi_reduction <maximumf>, %3, %cst [1] : vector<2x4x256xf32> to vector<2x256xf32>
    %6 = vector.shape_cast %5 : vector<2x256xf32> to vector<2x1x256xf32>
    %7 = arith.maximumf %4, %6 : vector<2x1x256xf32>
    %c0_6 = arith.constant 0 : index
    %c0_7 = arith.constant 0 : index
    %c0_8 = arith.constant 0 : index
    %8 = vector.load %arg5[%c0_6, %c0_7, %c0_8] : memref<2x1x256xf32, #tpu.memory_space<vmem>>, vector<2x1x256xf32>
    tpu.vector_store %arg5[%c0_6, %c0_7, %c0_8], %7 {strides = array<i32>} : memref<2x1x256xf32, #tpu.memory_space<vmem>>, vector<2x1x256xf32>,
    %c0_i32_9 = arith.constant 0 : i32
    %9 = arith.cmpi eq, %arg2, %c0_i32_9 : i32
    %10 = arith.extui %9 : i1 to i32
    %c0_i32_10 = arith.constant 0 : i32
    %11 = arith.cmpi ne, %10, %c0_i32_10 : i32
    scf.if %11 {
      %c0_11 = arith.constant 0 : index
      %c0_12 = arith.constant 0 : index
      %c0_13 = arith.constant 0 : index
      %12 = vector.load %arg5[%c0_11, %c0_12, %c0_13] : memref<2x1x256xf32, #tpu.memory_space<vmem>>, vector<2x1x256xf32>
      %c0_14 = arith.constant 0 : index
      %c0_15 = arith.constant 0 : index
      %c0_16 = arith.constant 0 : index
      %13 = vector.load %arg4[%c0_14, %c0_15, %c0_16] : memref<2x1x256xf32, #tpu.memory_space<vmem>>, vector<2x1x256xf32>
      tpu.vector_store %arg4[%c0_14, %c0_15, %c0_16], %12 {strides = array<i32>} : memref<2x1x256xf32, #tpu.memory_space<vmem>>, vector<2x1x256xf32>,
    } else {
    }
    return
  }
  func.func @transform_0(%arg0: i32, %arg1: i32, %arg2: i32) -> (i32, i32, i32) {
    %c0_i32 = arith.constant 0 : i32
    return %arg0, %arg2, %arg1 : i32, i32, i32
  }
  func.func @transform_1(%arg0: i32, %arg1: i32, %arg2: i32) -> (i32, i32, i32) {
    %c0_i32 = arith.constant 0 : i32
    %c0_i32_0 = arith.constant 0 : i32
    return %arg0, %c0_i32, %arg1 : i32, i32, i32
  }
}

</mosaic_0001>

<bundles_post_ra>
// kernel: squeeze.1
= control target key start
LH: loop header
LB: loop body
LE: loop exit
PB: predicated region body
PF: predicated region fallthrough
CT: control target
= control target key end

     0   :  { %s149_s0 = inlined_call_operand.vmem [shape: f32[2,256], index: 0, kind: input, shape index: {}]   ;;  %s150_s1 = inlined_call_operand.hbm [shape: f32[2,16,16], index: 1, kind: output, shape index: {}]  }
   0x1   :  { %v71_v0 = vld [vmem:[%s149_s0 + $0x2] sm:$0x3]  ;;  %v9_v1 = vld [vmem:[%s149_s0] sm:$0x3] }
   0x2   :  { %8 = vst [vmem:[#allocation2 + $0x8] sm:$0x3] %v71_v0  ;;  %10 = vst [vmem:[#allocation2] sm:$0x3] %v9_v1 }
   0x3   :  { %2 = vsyncpa [#allocation1], 0  ;;  %vm12_vm0 = vcmask 130048   ;;  %s104_s0 = smov 112   ;;  %s105_s10 = smov 80  }
   0x4   :  { %s106_s11 = smov 96   ;;  %s107_s12 = smov 64  }
   0x5   :  { %s108_s13 = smov 48   ;;  %s109_s14 = smov 32  }
   0x6   :  { %s110_s15 = smov 16   ;;  %s111_s16 = smov [#allocation0]  }
   0x7   :  { %s65_s17 = sshll.u32 %s111_s16, 4  ;;  %s66_s17 = int_to_ptr.vmem [resolvable:$true] %s65_s17 }
   0x8   :  { %s80_s18 = scalar_lea.vmem %s66_s17, 512  ;;  %p85_p1 = scmp.lt.s32.totalorder %s66_s17, %s66_s17 }
   0x9   :  { %v19_v2 = vld.sshfl [vmem:[#allocation2] sm:$0xff pattern:$0x99999180]   ;;  %p81_p0 = scmp.ne.s32.totalorder %s66_s17, %s80_s18  ;;  %p86_p2 = scmp.lt.s32.totalorder %s80_s18, %s80_s18 }
   0xa   :  { %v11_v3 = vld [vmem:[#allocation2] sm:$0x3]   ;;  %20 = vrot.lane.b32.xlu0 %v19_v2, %s104_s0  ;;  %32 = vrot.lane.b32.xlu1 %v19_v2, %s105_s10  ;;  %v15_v4 = vld [vmem:[#allocation2 + $0x8] sm:$0x3]  }
   0xb   :  { %13 = vst.msk [vmem:[#allocation0] ss:$16 sm:$0x3] %vm12_vm0, %v11_v3   ;;  %18 = vst.msk [vmem:[#allocation0 + $0x8] ss:$16 sm:$0x3] %vm12_vm0, %v15_v4   ;;  %p87_p3 = por %p86_p2, %p85_p1 }
   0xd   :  { %p88_p4 = pnand %p87_p3, %p81_p0 }
   0xe   :  { %26 = vrot.lane.b32.xlu0 %v19_v2, %s106_s11  ;;  %38 = vrot.lane.b32.xlu1 %v19_v2, %s107_s12 }
  0x12   :  { %44 = vrot.lane.b32.xlu0 %v19_v2, %s108_s13  ;;  %50 = vrot.lane.b32.xlu1 %v19_v2, %s109_s14 }
  0x16   :  { %56 = vrot.lane.b32.xlu0 %v19_v2, %s110_s15 }
  0x7c   :  { %v21_v5 = vpop.permute.xlu0 %20   ;;  %v33_v6 = vpop.permute.xlu1 %32  }
  0x7d   :  { %24 = vst.msk [vmem:[#allocation0 + $0x1] ss:$8 sm:$0xf] %vm12_vm0, %v21_v5   ;;  %36 = vst.msk [vmem:[#allocation0 + $0x3] ss:$8 sm:$0xf] %vm12_vm0, %v33_v6  }
  0x80   :  { %v27_v7 = vpop.permute.xlu0 %26   ;;  %v39_v8 = vpop.permute.xlu1 %38  }
  0x81   :  { %30 = vst.msk [vmem:[#allocation0 + $0x2] ss:$8 sm:$0xf] %vm12_vm0, %v27_v7   ;;  %42 = vst.msk [vmem:[#allocation0 + $0x4] ss:$8 sm:$0xf] %vm12_vm0, %v39_v8  }
  0x84   :  { %v45_v9 = vpop.permute.xlu0 %44   ;;  %v51_v10 = vpop.permute.xlu1 %50  }
  0x85   :  { %48 = vst.msk [vmem:[#allocation0 + $0x5] ss:$8 sm:$0xf] %vm12_vm0, %v45_v9   ;;  %54 = vst.msk [vmem:[#allocation0 + $0x6] ss:$8 sm:$0xf] %vm12_vm0, %v51_v10  }
  0x88   :  { %v57_v11 = vpop.permute.xlu0 %56  }
  0x89   :  { %60 = vst.msk [vmem:[#allocation0 + $0x7] ss:$8 sm:$0xf] %vm12_vm0, %v57_v11  }
  0x8a   :  { %91 = shalt.err (!%p88_p4)
}
  0x8b   :  { %s92_s21 = scalar_lea.hbm %s150_s1, 512 }
  0x8c   :  { %p93_p5 = scmp.ne.s32.totalorder %s150_s1, %s92_s21  ;;  %p96_p6 = scmp.lt.u32.totalorder %s92_s21, %s150_s1 }
  0x8e   :  { %p98_p7 = pnand %p96_p6, %p93_p5 }
  0x90   :  { %101 = shalt.err (!%p98_p7)
}
  0x91   :  { %68 = dma.vmem_to_hbm [thread:$0]  %s66_s17, 512, %s150_s1, [#allocation1]  }
  0x92   :  { %102 = dma.done.wait [#allocation1], 512  }
  0x93   :  { %103 = vsyncadd [#allocation1], 4294966784 }
  0x94   :  { %70 = vsyncpa [#allocation1], 1 }

</bundles_post_ra>
